<compile_context>
chip_gen: v7x
topology: tpu7x:2x2x1
jax: 0.10.0
libtpu: 0.0.40
codegen_flags: <defaults>
</compile_context>

<pallas_src>
import jax
import jax.numpy as jnp
from jax import lax
from jax.experimental import pallas as pl
from jax.experimental.pallas import tpu as pltpu


def _csl_sparse_kernel(x_ref, w_ref, m_ref, b_ref, o_ref, acc_ref):
    k = pl.program_id(2)

    @pl.when(k == 0)
    def _init():
        # Fold the bias into the accumulator up front (broadcast along tm).
        acc_ref[...] = jnp.broadcast_to(
            b_ref[...].astype(jnp.float32), acc_ref.shape
        )

    # Masked weight tile (VPU), then contract x[tm, tk] with w[tn, tk] along
    # the shared tk axis directly on the MXU — no transpose copy.
    w = m_ref[...] * w_ref[...]                               # [tn, tk]
    acc_ref[...] += lax.dot_general(
        x_ref[...], w,
        dimension_numbers=(((1,), (1,)), ((), ())),
        preferred_element_type=jnp.float32,
    )                                                         # [tm, tn]

    @pl.when(k == pl.num_programs(2) - 1)
    def _finalize():
        o_ref[...] = acc_ref[...].astype(o_ref.dtype)


def _round_up(v, m):
    return ((v + m - 1) // m) * m


def concat_squash_linear_sparse(x, weights, mask, bias, *, tm=128, tn=256, tk=256):
    """x: [B, dim_in], weights/mask: [dim_out, dim_in], bias: [dim_out]."""
    B, dim_in = x.shape
    dim_out = weights.shape[0]

    # Clamp tiles to the (aligned) problem size so tiny problems stay one block.
    tm = min(tm, _round_up(B, 8))
    tn = min(tn, _round_up(dim_out, 128))
    tk = min(tk, _round_up(dim_in, 128))

    Bp = _round_up(B, tm)
    Np = _round_up(dim_out, tn)
    Kp = _round_up(dim_in, tk)

    # Zero padding is exact: padded x columns meet padded weight columns (0*0),
    # padded output columns / batch rows are sliced off below.
    xp = jnp.pad(x, ((0, Bp - B), (0, Kp - dim_in)))
    wp = jnp.pad(weights, ((0, Np - dim_out), (0, Kp - dim_in)))
    mp = jnp.pad(mask.astype(weights.dtype), ((0, Np - dim_out), (0, Kp - dim_in)))
    bp = jnp.pad(bias, (0, Np - dim_out)).reshape(1, Np)

    grid = (Bp // tm, Np // tn, Kp // tk)

    itemsize = jnp.dtype(x.dtype).itemsize
    cost = pl.CostEstimate(
        flops=2 * Bp * Kp * Np + Bp * Np,
        transcendentals=0,
        bytes_accessed=(xp.size + wp.size + mp.size + bp.size + Bp * Np) * itemsize,
    )

    out = pl.pallas_call(
        _csl_sparse_kernel,
        out_shape=jax.ShapeDtypeStruct((Bp, Np), x.dtype),
        grid_spec=pltpu.PrefetchScalarGridSpec(
            num_scalar_prefetch=0,
            grid=grid,
            in_specs=[
                pl.BlockSpec((tm, tk), lambda i, j, k: (i, k)),   # x
                pl.BlockSpec((tn, tk), lambda i, j, k: (j, k)),   # weights
                pl.BlockSpec((tn, tk), lambda i, j, k: (j, k)),   # mask
                pl.BlockSpec((1, tn), lambda i, j, k: (0, j)),    # bias
            ],
            out_specs=pl.BlockSpec((tm, tn), lambda i, j, k: (i, j)),
            scratch_shapes=[pltpu.VMEM((tm, tn), jnp.float32)],
        ),
        compiler_params=pltpu.CompilerParams(
            dimension_semantics=("parallel", "parallel", "arbitrary"),
        ),
        cost_estimate=cost,
    )(xp, wp, mp, bp)

    # TODO(synk): for static masks inside an ODE/CNF loop, pre-masking the
    # weights (and/or bf16 operands) in the wrapper halves weight HBM traffic;
    # the fused in-kernel multiply is kept to preserve the module's forward
    # signature.
    return out[:B, :dim_out]


if __name__ == "__main__":
    # Small shapes consistent with the module: a plain masked Linear on flat features.
    B, dim_in, dim_out = 8, 32, 32

    key = jax.random.PRNGKey(0)
    kx, kw, kb, km = jax.random.split(key, 4)

    # Deterministic nn.Linear-style init: U(-1/sqrt(dim_in), 1/sqrt(dim_in)).
    bound = 1.0 / jnp.sqrt(jnp.float32(dim_in))
    weights = jax.random.uniform(kw, (dim_out, dim_in), jnp.float32, -bound, bound)
    bias = jax.random.uniform(kb, (dim_out,), jnp.float32, -bound, bound)
    # Deterministic sparsity mask (0/1), ~50% density.
    mask = (jax.random.uniform(km, (dim_out, dim_in)) > 0.5).astype(jnp.float32)

    x = jax.random.normal(kx, (B, dim_in), jnp.float32)

    out = concat_squash_linear_sparse(x, weights, mask, bias)
    out = jax.block_until_ready(out)

    # Reference check in plain JAX.
    ref = x @ (mask * weights).T + bias[None, :]
    assert out.shape == (B, dim_out)
    assert jnp.allclose(out, ref, atol=1e-5, rtol=1e-5)

    print("KERNEL_OK")
</pallas_src>

<mosaic_0001>
module attributes {stable_mosaic.version = 11 : i64} {
  func.func @_csl_sparse_kernel(%arg0: i32, %arg1: i32, %arg2: i32, %arg3: memref<8x128xf32, #tpu.memory_space<vmem>>, %arg4: memref<128x128xf32, #tpu.memory_space<vmem>>, %arg5: memref<128x128xf32, #tpu.memory_space<vmem>>, %arg6: memref<1x128xf32, #tpu.memory_space<vmem>>, %arg7: memref<8x128xf32, #tpu.memory_space<vmem>>, %arg8: memref<8x128xf32, #tpu.memory_space<vmem>>) attributes {dimension_semantics = [#tpu.dimension_semantics<parallel>, #tpu.dimension_semantics<parallel>, #tpu.dimension_semantics<arbitrary>], iteration_bounds = array<i64: 1, 1, 1>, scalar_prefetch = 0 : i64, scratch_operands = 1 : i64, tpu.core_type = #tpu.core_type<tc>, window_params = [{transform_indices = @transform_0, window_bounds = array<i64: 8, 128>}, {transform_indices = @transform_1, window_bounds = array<i64: 128, 128>}, {transform_indices = @transform_2, window_bounds = array<i64: 128, 128>}, {transform_indices = @transform_3, window_bounds = array<i64: 1, 128>}, {transform_indices = @transform_4, window_bounds = array<i64: 8, 128>}]} {
    %c0_i32 = arith.constant 0 : i32
    %0 = arith.cmpi eq, %arg2, %c0_i32 : i32
    %1 = arith.extui %0 : i1 to i32
    %c0_i32_0 = arith.constant 0 : i32
    %2 = arith.cmpi ne, %1, %c0_i32_0 : i32
    scf.if %2 {
      %c0_12 = arith.constant 0 : index
      %c0_13 = arith.constant 0 : index
      %14 = vector.load %arg6[%c0_12, %c0_13] : memref<1x128xf32, #tpu.memory_space<vmem>>, vector<1x128xf32>
      %15 = vector.shape_cast %14 : vector<1x128xf32> to vector<1x128xf32>
      %16 = vector.broadcast %15 : vector<1x128xf32> to vector<8x128xf32>
      %c0_14 = arith.constant 0 : index
      %c0_15 = arith.constant 0 : index
      %17 = vector.load %arg8[%c0_14, %c0_15] : memref<8x128xf32, #tpu.memory_space<vmem>>, vector<8x128xf32>
      tpu.vector_store %arg8[%c0_14, %c0_15], %16 {strides = array<i32>} : memref<8x128xf32, #tpu.memory_space<vmem>>, vector<8x128xf32>,
    } else {
    }
    %c0 = arith.constant 0 : index
    %c0_1 = arith.constant 0 : index
    %3 = vector.load %arg5[%c0, %c0_1] : memref<128x128xf32, #tpu.memory_space<vmem>>, vector<128x128xf32>
    %c0_2 = arith.constant 0 : index
    %c0_3 = arith.constant 0 : index
    %4 = vector.load %arg4[%c0_2, %c0_3] : memref<128x128xf32, #tpu.memory_space<vmem>>, vector<128x128xf32>
    %5 = arith.mulf %3, %4 : vector<128x128xf32>
    %c0_4 = arith.constant 0 : index
    %c0_5 = arith.constant 0 : index
    %6 = vector.load %arg8[%c0_4, %c0_5] : memref<8x128xf32, #tpu.memory_space<vmem>>, vector<8x128xf32>
    %c0_6 = arith.constant 0 : index
    %c0_7 = arith.constant 0 : index
    %7 = vector.load %arg3[%c0_6, %c0_7] : memref<8x128xf32, #tpu.memory_space<vmem>>, vector<8x128xf32>
    %cst = arith.constant dense<0.000000e+00> : vector<8x128xf32>
    %8 = tpu.matmul %7, %5, %cst {dimension_numbers = #tpu.dot_dimension_numbers<[1], [1], [0], [0], [0, 0, 1, 0], [], []>} : vector<8x128xf32>, vector<128x128xf32>, vector<8x128xf32> -> vector<8x128xf32>
    %9 = arith.addf %6, %8 : vector<8x128xf32>
    %c0_8 = arith.constant 0 : index
    %c0_9 = arith.constant 0 : index
    %10 = vector.load %arg8[%c0_8, %c0_9] : memref<8x128xf32, #tpu.memory_space<vmem>>, vector<8x128xf32>
    tpu.vector_store %arg8[%c0_8, %c0_9], %9 {strides = array<i32>} : memref<8x128xf32, #tpu.memory_space<vmem>>, vector<8x128xf32>,
    %c0_i32_10 = arith.constant 0 : i32
    %11 = arith.cmpi eq, %arg2, %c0_i32_10 : i32
    %12 = arith.extui %11 : i1 to i32
    %c0_i32_11 = arith.constant 0 : i32
    %13 = arith.cmpi ne, %12, %c0_i32_11 : i32
    scf.if %13 {
      %c0_12 = arith.constant 0 : index
      %c0_13 = arith.constant 0 : index
      %14 = vector.load %arg8[%c0_12, %c0_13] : memref<8x128xf32, #tpu.memory_space<vmem>>, vector<8x128xf32>
      %c0_14 = arith.constant 0 : index
      %c0_15 = arith.constant 0 : index
      %15 = vector.load %arg7[%c0_14, %c0_15] : memref<8x128xf32, #tpu.memory_space<vmem>>, vector<8x128xf32>
      tpu.vector_store %arg7[%c0_14, %c0_15], %14 {strides = array<i32>} : memref<8x128xf32, #tpu.memory_space<vmem>>, vector<8x128xf32>,
    } else {
    }
    return
  }
  func.func @transform_0(%arg0: i32, %arg1: i32, %arg2: i32) -> (i32, i32) {
    %c0_i32 = arith.constant 0 : i32
    return %arg0, %arg2 : i32, i32
  }
  func.func @transform_1(%arg0: i32, %arg1: i32, %arg2: i32) -> (i32, i32) {
    %c0_i32 = arith.constant 0 : i32
    return %arg1, %arg2 : i32, i32
  }
  func.func @transform_2(%arg0: i32, %arg1: i32, %arg2: i32) -> (i32, i32) {
    %c0_i32 = arith.constant 0 : i32
    return %arg1, %arg2 : i32, i32
  }
  func.func @transform_3(%arg0: i32, %arg1: i32, %arg2: i32) -> (i32, i32) {
    %c0_i32 = arith.constant 0 : i32
    %c0_i32_0 = arith.constant 0 : i32
    return %c0_i32, %arg1 : i32, i32
  }
  func.func @transform_4(%arg0: i32, %arg1: i32, %arg2: i32) -> (i32, i32) {
    %c0_i32 = arith.constant 0 : i32
    return %arg0, %arg1 : i32, i32
  }
}

</mosaic_0001>

<bundles_post_ra>
// kernel: tpu_custom_call.1
= control target key start
LH: loop header
LB: loop body
LE: loop exit
PB: predicated region body
PF: predicated region fallthrough
CT: control target
= control target key end

     0   :  { %9 = vsyncpa [#allocation4], 0  ;;  %s491_s0 = inlined_call_operand.hbm [shape: f32[8,128], index: 0, kind: input, shape index: {}]   ;;  %s492_s1 = inlined_call_operand.hbm [shape: f32[128,128], index: 1, kind: input, shape index: {}]   ;;  %s493_s2 = inlined_call_operand.hbm [shape: f32[128,128], index: 2, kind: input, shape index: {}]   ;;  %s494_s3 = inlined_call_operand.vmem [shape: f32[1,128], index: 3, kind: input, shape index: {}]   ;;  %s495_s4 = inlined_call_operand.hbm [shape: f32[8,128], index: 4, kind: output, shape index: {}]  }
   0x1   :  { %10 = vsyncpa [#allocation7], 0 }
   0x2   :  { %11 = vsyncpa [#allocation5], 0  ;;  %s392_s15 = smov [#allocation6]   ;;  %s298_s19 = scalar_lea.hbm %s492_s1, 2048 }
   0x3   :  { %s27_s16 = sshll.u32 %s392_s15, 4  ;;  %p299_p0 = scmp.ne.s32.totalorder %s492_s1, %s298_s19  ;;  %s28_s16 = int_to_ptr.vmem [resolvable:$true] %s27_s16 }
   0x4   :  { %p302_p1 = scmp.lt.u32.totalorder %s298_s19, %s492_s1 }
   0x6   :  { %p304_p2 = pnand %p302_p1, %p299_p0 }
   0x8   :  { %307 = shalt.err (!%p304_p2)
}
   0x9   :  { %s308_s24 = scalar_lea.vmem %s28_s16, 2048  ;;  %p313_p4 = scmp.lt.s32.totalorder %s28_s16, %s28_s16 }
   0xa   :  { %p309_p3 = scmp.ne.s32.totalorder %s28_s16, %s308_s24  ;;  %p314_p5 = scmp.lt.s32.totalorder %s308_s24, %s308_s24 }
   0xc   :  { %p315_p6 = por %p314_p5, %p313_p4 }
   0xe   :  { %p316_p7 = pnand %p315_p6, %p309_p3 }
  0x10   :  { %319 = shalt.err (!%p316_p7)
}
  0x11   :  { %s393_s25 = smov 128   ;;  %s394_s26 = smov 8  }
  0x12   :  { %33 = dma.hbm_to_vmem [thread:$0]  %s492_s1, 2048, %s28_s16, [#allocation7], %s393_s25, %s393_s25, %s394_s26  }
  0x13   :  { %s395_s29 = smov [#allocation3]   ;;  %s396_s5 = smov [#allocation8]  }
  0x14   :  { %s18_s30 = sshll.u32 %s395_s29, 4  ;;  %s39_s6 = sshll.u32 %s396_s5, 4  ;;  %s19_s30 = int_to_ptr.vmem [resolvable:$true] %s18_s30  ;;  %s40_s6 = int_to_ptr.vmem [resolvable:$true] %s39_s6 }
  0x15   :  { %s320_s9 = scalar_lea.hbm %s491_s0, 128 }
  0x16   :  { %p321_p8 = scmp.ne.s32.totalorder %s491_s0, %s320_s9  ;;  %p324_p9 = scmp.lt.u32.totalorder %s320_s9, %s491_s0 }
  0x18   :  { %p326_p10 = pnand %p324_p9, %p321_p8 }
  0x1a   :  { %329 = shalt.err (!%p326_p10)
}
  0x1b   :  { %s330_s1 = scalar_lea.vmem %s19_s30, 128  ;;  %p335_p12 = scmp.lt.s32.totalorder %s19_s30, %s19_s30 }
  0x1c   :  { %p331_p11 = scmp.ne.s32.totalorder %s19_s30, %s330_s1  ;;  %p336_p13 = scmp.lt.s32.totalorder %s330_s1, %s330_s1 }
  0x1e   :  { %p337_p0 = por %p336_p13, %p335_p12 }
  0x20   :  { %p338_p1 = pnand %p337_p0, %p331_p11 }
  0x22   :  { %341 = shalt.err (!%p338_p1)
}
  0x23   :  { %21 = dma.hbm_to_vmem [thread:$0]  %s491_s0, 128, %s19_s30, [#allocation4]  }
  0x24   :  { %s342_s18 = scalar_lea.hbm %s493_s2, 2048 }
  0x25   :  { %p343_p2 = scmp.ne.s32.totalorder %s493_s2, %s342_s18  ;;  %p346_p3 = scmp.lt.u32.totalorder %s342_s18, %s493_s2 }
  0x27   :  { %p348_p4 = pnand %p346_p3, %p343_p2 }
  0x29   :  { %351 = shalt.err (!%p348_p4)
}
  0x2a   :  { %s352_s23 = scalar_lea.vmem %s40_s6, 2048  ;;  %p357_p6 = scmp.lt.s32.totalorder %s40_s6, %s40_s6 }
  0x2b   :  { %p353_p5 = scmp.ne.s32.totalorder %s40_s6, %s352_s23  ;;  %p358_p7 = scmp.lt.s32.totalorder %s352_s23, %s352_s23 }
  0x2d   :  { %p359_p8 = por %p358_p7, %p357_p6 }
  0x2f   :  { %p360_p9 = pnand %p359_p8, %p353_p5 }
  0x31   :  { %363 = shalt.err (!%p360_p9)
}
  0x32   :  { %45 = dma.hbm_to_vmem [thread:$0]  %s493_s2, 2048, %s40_s6, [#allocation7], %s393_s25, %s393_s25, %s394_s26  }
  0x33   :  { %386 = dma.done.wait [#allocation4], 128  }
  0x34   :  { %387 = vsyncadd [#allocation4], 4294967168 }
  0x35   :  { %388 = dma.done.wait [#allocation7], 4096  }
  0x36   :  { %389 = vsyncadd [#allocation7], 4294963200  ;;  %v397_v0 = vmov 0.0|0.0   ;;  %vm398_vm0 = vmmov 0   ;;  %v399_v1 = vmov 0.0   ;;  %v69_v2 = vld [vmem:[#allocation8] sm:$0xff] }
  0x37   :  { %265 = vmatprep.subr.bf16.mxu0 %v397_v0  ;;  %262 = vmatprep.mubr.msk.f32.mxu0 %vm398_vm0, %v399_v1  ;;  %v70_v3 = vld [vmem:[#allocation8 + $0x8] sm:$0xff]  ;;  %v85_v4 = vld [vmem:[#allocation6] sm:$0xff]  ;;  %v71_v8 = vld [vmem:[#allocation8 + $0x10] sm:$0xff]  ;;  %s400_s26 = smov [#allocation9]  }
  0x38   :  { %v86_v5 = vld [vmem:[#allocation6 + $0x8] sm:$0xff]  ;;  %v101_v6 = vmul.f32 %v85_v4, %v69_v2  ;;  %v72_v9 = vld [vmem:[#allocation8 + $0x18] sm:$0xff]  ;;  %v87_v10 = vld [vmem:[#allocation6 + $0x10] sm:$0xff]  ;;  %s202_s27 = sshll.u32 %s400_s26, 4  ;;  %s203_s27 = int_to_ptr.vmem [resolvable:$true] %s202_s27 }
  0x39   :  { %v102_v7 = vmul.f32 %v86_v5, %v70_v3  ;;  %v88_v11 = vld [vmem:[#allocation6 + $0x18] sm:$0xff]  ;;  %v103_v13 = vmul.f32 %v87_v10, %v71_v8  ;;  %v73_v16 = vld [vmem:[#allocation8 + $0x20] sm:$0xff]  ;;  %v74_v17 = vld [vmem:[#allocation8 + $0x28] sm:$0xff]  ;;  %s364_s28 = scalar_lea.vmem %s203_s27, 128  ;;  %p369_p11 = scmp.lt.s32.totalorder %s203_s27, %s203_s27 }
  0x3a   :  { %v104_v14 = vmul.f32 %v88_v11, %v72_v9  ;;  %v89_v18 = vld [vmem:[#allocation6 + $0x20] sm:$0xff]  ;;  %v90_v19 = vld [vmem:[#allocation6 + $0x28] sm:$0xff]  ;;  %v75_v23 = vld [vmem:[#allocation8 + $0x30] sm:$0xff]  ;;  %p365_p10 = scmp.ne.s32.totalorder %s203_s27, %s364_s28  ;;  %p370_p12 = scmp.lt.s32.totalorder %s364_s28, %s364_s28 }
  0x3b   :  { %v266_v12 = vpack.c.bf16 %v102_v7, %v101_v6  ;;  %v105_v20 = vmul.f32 %v89_v18, %v73_v16  ;;  %v106_v21 = vmul.f32 %v90_v19, %v74_v17  ;;  %v76_v24 = vld [vmem:[#allocation8 + $0x38] sm:$0xff]  ;;  %v91_v25 = vld [vmem:[#allocation6 + $0x30] sm:$0xff]  ;;  %v77_v30 = vld [vmem:[#allocation8 + $0x40] sm:$0xff] }
  0x3c   :  { %v269_v15 = vpack.c.bf16 %v104_v14, %v103_v13  ;;  %v92_v26 = vld [vmem:[#allocation6 + $0x38] sm:$0xff]  ;;  %v107_v27 = vmul.f32 %v91_v25, %v75_v23  ;;  %v78_v31 = vld [vmem:[#allocation8 + $0x48] sm:$0xff]  ;;  %v93_v32 = vld [vmem:[#allocation6 + $0x40] sm:$0xff]  ;;  %p371_p13 = por %p370_p12, %p369_p11 }
  0x3d   :  { %267 = vmatpush3.bf16.xpose.msra.mxu0 %v266_v12  ;;  %v272_v22 = vpack.c.bf16 %v106_v21, %v105_v20  ;;  %v108_v28 = vmul.f32 %v92_v26, %v76_v24  ;;  %v94_v33 = vld [vmem:[#allocation6 + $0x48] sm:$0xff]  ;;  %v109_v34 = vmul.f32 %v93_v32, %v77_v30  ;;  %v79_v37 = vld [vmem:[#allocation8 + $0x50] sm:$0xff]  ;;  %v80_v38 = vld [vmem:[#allocation8 + $0x58] sm:$0xff] }
  0x3e   :  { %268 = vmatprep.subr.bf16.mxu0 %v397_v0  ;;  %v110_v35 = vmul.f32 %v94_v33, %v78_v31  ;;  %v95_v39 = vld [vmem:[#allocation6 + $0x50] sm:$0xff]  ;;  %v96_v40 = vld [vmem:[#allocation6 + $0x58] sm:$0xff]  ;;  %v81_v44 = vld [vmem:[#allocation8 + $0x60] sm:$0xff]  ;;  %p372_p0 = pnand %p371_p13, %p365_p10 }
  0x3f   :  { %v275_v29 = vpack.c.bf16 %v108_v28, %v107_v27  ;;  %v111_v41 = vmul.f32 %v95_v39, %v79_v37  ;;  %v112_v42 = vmul.f32 %v96_v40, %v80_v38  ;;  %v82_v45 = vld [vmem:[#allocation8 + $0x68] sm:$0xff]  ;;  %v97_v46 = vld [vmem:[#allocation6 + $0x60] sm:$0xff]  ;;  %v83_v51 = vld [vmem:[#allocation8 + $0x70] sm:$0xff] }
  0x40   :  { %v278_v36 = vpack.c.bf16 %v110_v35, %v109_v34  ;;  %v98_v47 = vld [vmem:[#allocation6 + $0x68] sm:$0xff]  ;;  %v113_v48 = vmul.f32 %v97_v46, %v81_v44  ;;  %v84_v52 = vld [vmem:[#allocation8 + $0x78] sm:$0xff]  ;;  %v99_v53 = vld [vmem:[#allocation6 + $0x70] sm:$0xff] }
  0x41   :  { %v281_v43 = vpack.c.bf16 %v112_v42, %v111_v41  ;;  %v114_v49 = vmul.f32 %v98_v47, %v82_v45  ;;  %v100_v54 = vld [vmem:[#allocation6 + $0x78] sm:$0xff]  ;;  %v115_v55 = vmul.f32 %v99_v53, %v83_v51 }
  0x42   :  { %v116_v56 = vmul.f32 %v100_v54, %v84_v52  ;;  %v118_v58 = vld [vmem:[#allocation3] sm:$0xff] }
  0x43   :  { %v284_v50 = vpack.c.bf16 %v114_v49, %v113_v48  ;;  %v212_v59 = vld [vmem:[%s494_s3] ss:$0 sm:$0xff] }
  0x44   :  { %v287_v57 = vpack.c.bf16 %v116_v56, %v115_v55 }
  0x45   :  { %270 = vmatpush3.bf16.xpose.msra.mxu0 %v269_v15 }
  0x46   :  { %271 = vmatprep.subr.bf16.mxu0 %v397_v0 }
  0x4d   :  { %273 = vmatpush3.bf16.xpose.msra.mxu0 %v272_v22 }
  0x4e   :  { %274 = vmatprep.subr.bf16.mxu0 %v397_v0 }
  0x55   :  { %276 = vmatpush3.bf16.xpose.msra.mxu0 %v275_v29 }
  0x56   :  { %277 = vmatprep.subr.bf16.mxu0 %v397_v0 }
  0x5d   :  { %279 = vmatpush3.bf16.xpose.msra.mxu0 %v278_v36 }
  0x5e   :  { %280 = vmatprep.subr.bf16.mxu0 %v397_v0 }
  0x65   :  { %282 = vmatpush3.bf16.xpose.msra.mxu0 %v281_v43 }
  0x66   :  { %283 = vmatprep.subr.bf16.mxu0 %v397_v0 }
  0x6d   :  { %285 = vmatpush3.bf16.xpose.msra.mxu0 %v284_v50 }
  0x6e   :  { %286 = vmatprep.subr.bf16.mxu0 %v397_v0 }
  0x75   :  { %288 = vmatpush3.bf16.xpose.msra.mxu0 %v287_v57 }
  0x7c   :  { %263 = vmatmul.mubr.f32.vlgmr.msra.gmra.mrb[0].mxu0 %v118_v58 }
 0x14f   :  { %v185_v60 = vpop.f32.mrb[0].mxu0 }
 0x150   :  { %v189_v61 = vadd.f32 %v212_v59, %v185_v60  ;;  %v264_v62 = vpop.f32.mrb[1].mxu0 }
 0x152   :  { %195 = vst [vmem:[#allocation9] sm:$0xff] %v189_v61 }
 0x153   :  { %375 = shalt.err (!%p372_p0)
}
 0x154   :  { %s376_s5 = scalar_lea.hbm %s495_s4, 128 }
 0x155   :  { %p377_p1 = scmp.ne.s32.totalorder %s495_s4, %s376_s5  ;;  %p380_p2 = scmp.lt.u32.totalorder %s376_s5, %s495_s4 }
 0x157   :  { %p382_p3 = pnand %p380_p2, %p377_p1 }
 0x159   :  { %385 = shalt.err (!%p382_p3)
}
 0x15a   :  { %205 = dma.vmem_to_hbm [thread:$0]  %s203_s27, 128, %s495_s4, [#allocation5]  }
 0x15b   :  { %390 = dma.done.wait [#allocation5], 128  }
 0x15c   :  { %391 = vsyncadd [#allocation5], 4294967168 }
 0x15d   :  { %209 = vsyncpa [#allocation4], 1 }
 0x15e   :  { %210 = vsyncpa [#allocation7], 1 }
 0x15f   :  { %211 = vsyncpa [#allocation5], 1 }

</bundles_post_ra>
